<compile_context>
chip_gen: v7x
topology: tpu7x:2x2x1
jax: 0.10.0
libtpu: 0.0.40
codegen_flags: <defaults>
</compile_context>

<pallas_src>
import jax
import jax.numpy as jnp
from jax import lax
from jax.experimental import pallas as pl
from jax.experimental.pallas import tpu as pltpu


def _se_token_kernel(x_ref, w1t_ref, w2t_ref, o_ref):
    """Whole batch in one grid step.

    x_ref  : (b, c, n)    activations, ORIGINAL spatial order (n = h*w)
    w1t_ref: (2*c4, c)    [w1_center | w1_background]^T  (first MLP layer)
    w2t_ref: (L, 2*c4)    [w2_center ; w2_background]^T  (second MLP layer)
    o_ref  : (b, L, c)    tokens
    """
    b, c, n = x_ref.shape
    two_c4 = w1t_ref.shape[0]
    c4 = two_c4 // 2
    tl = w2t_ref.shape[0]
    mid = n // 2

    x = x_ref[...]                                            # (b, c, n) f32

    # ---- First MLP layer: contract the channel axis directly.
    # h[b, f, p] = sum_c w1t[f, c] * x[b, c, p]   (== einsum('bfc,bcn->bfn'))
    w1b = jnp.broadcast_to(w1t_ref[...], (b, two_c4, c))
    h = lax.dot_general(
        w1b, x,
        dimension_numbers=(((2,), (1,)), ((0,), (0,))),
        preferred_element_type=jnp.float32)                   # (b, 2*c4, n)

    # ---- ReLU + center/background routing BEFORE the second matmul.
    # Keep the fc_center half of the hidden features only at position n//2,
    # and the fc half everywhere else (pure VPU iota + select, no lane work).
    feat = lax.broadcasted_iota(jnp.int32, (b, two_c4, n), 1)
    pos = lax.broadcasted_iota(jnp.int32, (b, two_c4, n), 2)
    keep = (feat < c4) == (pos == mid)
    h = jnp.where(keep, jnp.maximum(h, 0.0), 0.0)

    # ---- Second MLP layer with the stacked weight [w2c; w2]^T.
    # t[b, l, p] = sum_f w2t[l, f] * h[b, f, p]   (== einsum('blf,bfn->bln'))
    w2b = jnp.broadcast_to(w2t_ref[...], (b, tl, two_c4))
    t = lax.dot_general(
        w2b, h,
        dimension_numbers=(((2,), (1,)), ((0,), (0,))),
        preferred_element_type=jnp.float32)                   # (b, L, n)

    # ---- Softmax over the token axis (PyTorch softmax(dim=-2) on (b, L, n)).
    # Exact normalization: the EUP/VPU is nowhere near the bottleneck here.
    t = t - jnp.max(t, axis=1, keepdims=True)
    e = jnp.exp(t)
    attn = e / jnp.sum(e, axis=1, keepdims=True)              # (b, L, n)

    # ---- tokens[b, l, c] = sum_n attn[b, l, n] * x[b, c, n]
    # One batched NT contraction (== einsum('bln,bcn->blc')), one store.
    tok = lax.dot_general(
        attn, x,
        dimension_numbers=(((2,), (2,)), ((0,), (0,))),
        preferred_element_type=jnp.float32)                   # (b, L, c)
    o_ref[...] = tok.astype(o_ref.dtype)


def fuse_params(params):
    """One-time (init-time) weight fusion — hoisted out of the per-call path.

    nn.Linear(in, out, bias=False) weights are stored as (in, out); the kernel
    consumes them transposed so both MLP layers run as batched matmuls with
    the contraction on the lhs's last axis (no in-kernel transposes).
    """
    w1c, w2c, w1, w2 = params["w1c"], params["w2c"], params["w1"], params["w2"]
    w1t = jnp.concatenate([w1c, w1], axis=1).T                # (2*c4, c)
    w2t = jnp.concatenate([w2c, w2], axis=0).T                # (L, 2*c4)
    return {"w1t": jnp.asarray(w1t), "w2t": jnp.asarray(w2t)}


def tokenizer_se_block_forward(x, fused, patches):
    """Matches tokenizer_se_block.forward (fc_context / sigmoid are unused)."""
    w1t, w2t = fused["w1t"], fused["w2t"]
    b, c, h, w = x.shape
    token_len = w2t.shape[0]
    c4 = w1t.shape[0] // 2

    if patches == 1:
        # Degenerate branch: a single spatial position per image (plain JAX).
        xc = x.reshape(b, c)
        t = jnp.maximum(xc @ w1t[:c4].T, 0.0) @ w2t[:, :c4].T          # (b, L)
        attn = jax.nn.softmax(t, axis=-1)
        return attn[:, :, None] * xc[:, None, :]                       # (b, L, c)

    n = h * w
    x_bcn = x.reshape(b, c, n)        # layout-preserving view; no swapaxes

    return pl.pallas_call(
        _se_token_kernel,
        out_shape=jax.ShapeDtypeStruct((b, token_len, c), jnp.float32),
        grid=(1,),                                   # whole problem, one step
        in_specs=[
            pl.BlockSpec((b, c, n), lambda i: (0, 0, 0)),
            pl.BlockSpec((2 * c4, c), lambda i: (0, 0)),
            pl.BlockSpec((token_len, 2 * c4), lambda i: (0, 0)),
        ],
        out_specs=pl.BlockSpec((b, token_len, c), lambda i: (0, 0, 0)),
        compiler_params=pltpu.CompilerParams(
            dimension_semantics=("arbitrary",)),
    )(x_bcn, w1t, w2t)


def _reference(x, params):
    """Pure-JAX transcription of the PyTorch forward (patches != 1)."""
    hi = lax.Precision.HIGHEST
    w1c, w2c, w1, w2 = params["w1c"], params["w2c"], params["w1"], params["w2"]
    b, c, h, w = x.shape
    n = h * w
    avg = x.reshape(b, c, n)
    center = avg[:, :, n // 2]                                          # (b, c)
    background = jnp.concatenate(
        [avg[:, :, :n // 2], avg[:, :, n // 2 + 1:]], axis=-1)          # (b, c, n-1)
    avg2 = jnp.concatenate([center[:, :, None], background], axis=-1)   # (b, c, n)
    bg_t = jnp.swapaxes(background, 1, 2)                               # (b, n-1, c)
    ct = jnp.dot(jnp.maximum(jnp.dot(center, w1c, precision=hi), 0.0),
                 w2c, precision=hi)                                     # (b, L)
    bg = jnp.matmul(jnp.maximum(jnp.matmul(bg_t, w1, precision=hi), 0.0),
                    w2, precision=hi)                                   # (b, n-1, L)
    attn = jnp.concatenate(
        [ct[:, :, None], jnp.swapaxes(bg, 1, 2)], axis=-1)              # (b, L, n)
    attn = jax.nn.softmax(attn, axis=-2)
    return jnp.einsum("bln,bcn->blc", attn, avg2, precision=hi)


if __name__ == "__main__":
    B, C, H, W = 2, 32, 4, 4          # args.patches = 4  ->  h*w = patches**2 = 16
    PATCHES = 4
    RATIO = 4
    L = C // RATIO // 2               # token_len = 4

    key = jax.random.PRNGKey(0)
    kx, k1, k2, k3, k4 = jax.random.split(key, 5)
    x = jax.random.normal(kx, (B, C, H, W), dtype=jnp.float32)

    # nn.Linear(in, out, bias=False) weights, stored pre-transposed as (in, out).
    params = {
        "w1c": jax.random.normal(k1, (C, C // RATIO), jnp.float32) * (C ** -0.5),
        "w2c": jax.random.normal(k2, (C // RATIO, L), jnp.float32) * ((C // RATIO) ** -0.5),
        "w1":  jax.random.normal(k3, (C, C // RATIO), jnp.float32) * (C ** -0.5),
        "w2":  jax.random.normal(k4, (C // RATIO, L), jnp.float32) * ((C // RATIO) ** -0.5),
    }

    fused = fuse_params(params)       # init-time weight fusion (not per-call)

    fwd = jax.jit(lambda v: tokenizer_se_block_forward(v, fused, PATCHES))
    out = jax.block_until_ready(fwd(x))

    ref = _reference(x, params)
    assert out.shape == (B, L, C), out.shape
    err = float(jnp.max(jnp.abs(out - ref)))
    # Exact softmax division; the tolerance only covers MXU f32
    # accumulation-order / emulation-mode differences vs the XLA reference.
    assert jnp.allclose(out, ref, atol=2e-3, rtol=2e-3), err

    print("KERNEL_OK")
</pallas_src>

<mosaic_0001>
module attributes {stable_mosaic.version = 11 : i64} {
  func.func @_se_token_kernel(%arg0: i32, %arg1: memref<2x32x16xf32, #tpu.memory_space<vmem>>, %arg2: memref<16x32xf32, #tpu.memory_space<vmem>>, %arg3: memref<4x16xf32, #tpu.memory_space<vmem>>, %arg4: memref<2x4x32xf32, #tpu.memory_space<vmem>>) attributes {dimension_semantics = [#tpu.dimension_semantics<arbitrary>], iteration_bounds = array<i64: 1>, scalar_prefetch = 0 : i64, scratch_operands = 0 : i64, tpu.core_type = #tpu.core_type<tc>, window_params = [{pipeline_mode = #tpu.pipeline_mode<synchronous>, transform_indices = @transform_0, window_bounds = array<i64: 2, 32, 16>}, {pipeline_mode = #tpu.pipeline_mode<synchronous>, transform_indices = @transform_1, window_bounds = array<i64: 16, 32>}, {pipeline_mode = #tpu.pipeline_mode<synchronous>, transform_indices = @transform_2, window_bounds = array<i64: 4, 16>}, {pipeline_mode = #tpu.pipeline_mode<synchronous>, transform_indices = @transform_3, window_bounds = array<i64: 2, 4, 32>}]} {
    %c0 = arith.constant 0 : index
    %c0_0 = arith.constant 0 : index
    %c0_1 = arith.constant 0 : index
    %0 = vector.load %arg1[%c0, %c0_0, %c0_1] : memref<2x32x16xf32, #tpu.memory_space<vmem>>, vector<2x32x16xf32>
    %c0_2 = arith.constant 0 : index
    %c0_3 = arith.constant 0 : index
    %1 = vector.load %arg2[%c0_2, %c0_3] : memref<16x32xf32, #tpu.memory_space<vmem>>, vector<16x32xf32>
    %2 = vector.shape_cast %1 : vector<16x32xf32> to vector<1x16x32xf32>
    %3 = vector.broadcast %2 : vector<1x16x32xf32> to vector<2x16x32xf32>
    %cst = arith.constant dense<0.000000e+00> : vector<2x16x16xf32>
    %4 = tpu.matmul %3, %0, %cst {dimension_numbers = #tpu.dot_dimension_numbers<[2], [1], [1], [2], [0, 0, 0, 1, 1, 2], [0], [0]>} : vector<2x16x32xf32>, vector<2x32x16xf32>, vector<2x16x16xf32> -> vector<2x16x16xf32>
    %5 = tpu.iota {dimensions = array<i32: 1>} : vector<2x16x16xi32>
    %6 = tpu.iota {dimensions = array<i32: 2>} : vector<2x16x16xi32>
    %c8_i32 = arith.constant 8 : i32
    %7 = vector.broadcast %c8_i32 : i32 to vector<2x16x16xi32>
    %8 = arith.cmpi slt, %5, %7 : vector<2x16x16xi32>
    %c8_i32_4 = arith.constant 8 : i32
    %9 = vector.broadcast %c8_i32_4 : i32 to vector<2x16x16xi32>
    %10 = arith.cmpi eq, %6, %9 : vector<2x16x16xi32>
    %11 = arith.xori %8, %10 : vector<2x16x16xi1>
    %cst_5 = arith.constant dense<true> : vector<2x16x16xi1>
    %12 = arith.xori %11, %cst_5 : vector<2x16x16xi1>
    %cst_6 = arith.constant 0.000000e+00 : f32
    %13 = vector.broadcast %cst_6 : f32 to vector<2x16x16xf32>
    %14 = arith.maximumf %4, %13 : vector<2x16x16xf32>
    %cst_7 = arith.constant 0.000000e+00 : f32
    %15 = vector.broadcast %cst_7 : f32 to vector<2x16x16xf32>
    %16 = arith.select %12, %14, %15 : vector<2x16x16xi1>, vector<2x16x16xf32>
    %c0_8 = arith.constant 0 : index
    %c0_9 = arith.constant 0 : index
    %17 = vector.load %arg3[%c0_8, %c0_9] : memref<4x16xf32, #tpu.memory_space<vmem>>, vector<4x16xf32>
    %18 = vector.shape_cast %17 : vector<4x16xf32> to vector<1x4x16xf32>
    %19 = vector.broadcast %18 : vector<1x4x16xf32> to vector<2x4x16xf32>
    %cst_10 = arith.constant dense<0.000000e+00> : vector<2x4x16xf32>
    %20 = tpu.matmul %19, %16, %cst_10 {dimension_numbers = #tpu.dot_dimension_numbers<[2], [1], [1], [2], [0, 0, 0, 1, 1, 2], [0], [0]>} : vector<2x4x16xf32>, vector<2x16x16xf32>, vector<2x4x16xf32> -> vector<2x4x16xf32>
    %cst_11 = arith.constant dense<0xFF800000> : vector<2x16xf32>
    %21 = vector.multi_reduction <maximumf>, %20, %cst_11 [1] : vector<2x4x16xf32> to vector<2x16xf32>
    %22 = vector.shape_cast %21 : vector<2x16xf32> to vector<2x1x16xf32>
    %23 = vector.broadcast %22 : vector<2x1x16xf32> to vector<2x4x16xf32>
    %24 = arith.subf %20, %23 : vector<2x4x16xf32>
    %25 = math.exp %24 : vector<2x4x16xf32>
    %cst_12 = arith.constant dense<0.000000e+00> : vector<2x16xf32>
    %26 = vector.multi_reduction <add>, %25, %cst_12 [1] : vector<2x4x16xf32> to vector<2x16xf32>
    %27 = vector.shape_cast %26 : vector<2x16xf32> to vector<2x1x16xf32>
    %28 = vector.broadcast %27 : vector<2x1x16xf32> to vector<2x4x16xf32>
    %29 = arith.divf %25, %28 : vector<2x4x16xf32>
    %cst_13 = arith.constant dense<0.000000e+00> : vector<2x4x32xf32>
    %30 = tpu.matmul %29, %0, %cst_13 {dimension_numbers = #tpu.dot_dimension_numbers<[2], [2], [1], [1], [0, 0, 0, 1, 1, 1], [0], [0]>} : vector<2x4x16xf32>, vector<2x32x16xf32>, vector<2x4x32xf32> -> vector<2x4x32xf32>
    %c0_14 = arith.constant 0 : index
    %c0_15 = arith.constant 0 : index
    %c0_16 = arith.constant 0 : index
    %31 = vector.load %arg4[%c0_14, %c0_15, %c0_16] : memref<2x4x32xf32, #tpu.memory_space<vmem>>, vector<2x4x32xf32>
    tpu.vector_store %arg4[%c0_14, %c0_15, %c0_16], %30 {strides = array<i32>} : memref<2x4x32xf32, #tpu.memory_space<vmem>>, vector<2x4x32xf32>,
    return
  }
  func.func @transform_0(%arg0: i32) -> (i32, i32, i32) {
    %c0_i32 = arith.constant 0 : i32
    %c0_i32_0 = arith.constant 0 : i32
    %c0_i32_1 = arith.constant 0 : i32
    %c0_i32_2 = arith.constant 0 : i32
    return %c0_i32, %c0_i32_0, %c0_i32_1 : i32, i32, i32
  }
  func.func @transform_1(%arg0: i32) -> (i32, i32) {
    %c0_i32 = arith.constant 0 : i32
    %c0_i32_0 = arith.constant 0 : i32
    %c0_i32_1 = arith.constant 0 : i32
    return %c0_i32, %c0_i32_0 : i32, i32
  }
  func.func @transform_2(%arg0: i32) -> (i32, i32) {
    %c0_i32 = arith.constant 0 : i32
    %c0_i32_0 = arith.constant 0 : i32
    %c0_i32_1 = arith.constant 0 : i32
    return %c0_i32, %c0_i32_0 : i32, i32
  }
  func.func @transform_3(%arg0: i32) -> (i32, i32, i32) {
    %c0_i32 = arith.constant 0 : i32
    %c0_i32_0 = arith.constant 0 : i32
    %c0_i32_1 = arith.constant 0 : i32
    %c0_i32_2 = arith.constant 0 : i32
    return %c0_i32, %c0_i32_0, %c0_i32_1 : i32, i32, i32
  }
}

</mosaic_0001>

<bundles_post_ra>
// kernel: _lambda_.1
= control target key start
LH: loop header
LB: loop body
LE: loop exit
PB: predicated region body
PF: predicated region fallthrough
CT: control target
= control target key end

     0   :  { %vm25_vm0 = vcmask 261120   ;;  %s856_s0 = inlined_call_operand.vmem [shape: f32[2,32,16], index: 0, kind: input, shape index: {}]   ;;  %s857_s1 = inlined_call_operand.vmem [shape: f32[16,32], index: 1, kind: input, shape index: {}]   ;;  %s858_s2 = inlined_call_operand.vmem [shape: f32[4,16], index: 2, kind: input, shape index: {}]   ;;  %s859_s3 = inlined_call_operand.hbm [shape: f32[2,4,32], index: 3, kind: output, shape index: {}]  }
   0x1   :  { %v15_v0 = vld [vmem:[%s856_s0] sm:$0xff]  ;;  %v16_v1 = vld [vmem:[%s856_s0 + $0x8] sm:$0xff]  ;;  %v17_v5 = vld [vmem:[%s856_s0 + $0x10] sm:$0xff] }
   0x2   :  { %v19_v2 = vld [vmem:[%s856_s0 + $0x20] sm:$0xff]  ;;  %v681_v3 = vpack.c.bf16 %v16_v1, %v15_v0  ;;  %v20_v4 = vld [vmem:[%s856_s0 + $0x28] sm:$0xff]  ;;  %v18_v6 = vld [vmem:[%s856_s0 + $0x18] sm:$0xff] }
   0x3   :  { %v689_v7 = vpack.c.bf16 %v20_v4, %v19_v2  ;;  %v685_v8 = vpack.c.bf16 %v18_v6, %v17_v5  ;;  %v21_v9 = vld [vmem:[%s856_s0 + $0x30] sm:$0xff]  ;;  %v22_v10 = vld [vmem:[%s856_s0 + $0x38] sm:$0xff]  ;;  %v23_v11 = vld [vmem:[%s857_s1] sm:$0xff] }
   0x4   :  { %682 = vmatprep.subr.bf16.mxu0 %v681_v3  ;;  %v693_v12 = vpack.c.bf16 %v22_v10, %v21_v9  ;;  %631 = vmatprep.mubr.msk.f32.mxu0 %vm25_vm0, %v23_v11 }
   0x5   :  { %8 = vsyncpa [#allocation3], 0  ;;  %690 = vmatprep.subr.bf16.mxu1 %v689_v7  ;;  %684 = vmatpush3.bf16.msra.mxu0 %v681_v3  ;;  %v24_v13 = vld [vmem:[%s857_s1 + $0x8] sm:$0xff]  ;;  %v760_v14 = vmov 0.0|0.0   ;;  %vm761_vm1 = vmmov 0   ;;  %v762_v15 = vmov 0.0   ;;  %v185_v16 = vlaneseq }
   0x6   :  { %692 = vmatpush3.bf16.msra.mxu1 %v689_v7  ;;  %686 = vmatprep.subr.bf16.mxu0 %v685_v8  ;;  %vm763_vm3 = vmmov 1   ;;  %v202_v29 = vld [vmem:[%s858_s2] sm:$0xf]  ;;  %vm203_vm8 = vcmask 130048   ;;  %vm347_vm10 = vcmask 125952   ;;  %s764_s2 = smov [#allocation2]  }
   0x7   :  { %694 = vmatprep.subr.bf16.mxu1 %v693_v12  ;;  %642 = vmatprep.mubr.msk.f32.mxu1 %vm25_vm0, %v23_v11  ;;  %v186_v17 = vand.u32 127, %v185_v16  ;;  %vm707_vm9 = vmpackc.low %vm203_vm8, %vm203_vm8  ;;  %s564_s5 = sshll.u32 %s764_s2, 4  ;;  %vm556_vm11 = vcmask 257024   ;;  %s565_s5 = int_to_ptr.vmem [resolvable:$true] %s564_s5 }
   0x8   :  { %s736_s6 = scalar_lea.vmem %s565_s5, 128  ;;  %p741_p1 = scmp.lt.s32.totalorder %s565_s5, %s565_s5 }
   0x9   :  { %688 = vmatpush3.bf16.msra.mxu0 %v685_v8  ;;  %vm189_vm2 = vcmp.eq.s32.totalorder %v186_v17, 8  ;;  %p737_p0 = scmp.ne.s32.totalorder %s565_s5, %s736_s6  ;;  %p742_p2 = scmp.lt.s32.totalorder %s736_s6, %s736_s6 }
   0xa   :  { %696 = vmatpush3.bf16.msra.mxu1 %v693_v12  ;;  %697 = vmatprep.subr.bf16.mxu0 %v760_v14  ;;  %vm190_vm4 = vmxor %vm763_vm3, %vm189_vm2 }
   0xb   :  { %701 = vmatprep.subr.bf16.mxu1 %v760_v14  ;;  %vm823_vm5 = vmxor %vm190_vm4, %vm763_vm3  ;;  %p743_p3 = por %p742_p2, %p741_p1 }
   0xc   :  { %632 = vmatmul.mubr.msk.f32.vlgmr.msra.gmra.mrb[0].mxu0 %vm25_vm0, %v24_v13  ;;  %vm193_vm6 = vmxor %vm189_vm2, %vm763_vm3 }
   0xd   :  { %643 = vmatmul.mubr.msk.f32.vlgmr.msra.gmra.mrb[0].mxu1 %vm25_vm0, %v24_v13  ;;  %649 = vmatprep.mubr.msk.f32.mxu0 %vm761_vm1, %v762_v15  ;;  %vm699_vm7 = vmpackc.low %vm193_vm6, %vm823_vm5  ;;  %p744_p4 = pnand %p743_p3, %p737_p0 }
   0xe   :  { %656 = vmatprep.mubr.msk.f32.mxu1 %vm761_vm1, %v762_v15 }
  0xdf   :  { %v633_v19 = vpop.f32.mrb[0].mxu0 }
  0xe0   :  { %v195_v20 = vmax.f32 %v633_v19, 0.0  ;;  %v644_v21 = vpop.f32.mrb[0].mxu1  ;;  %v98_v22 = vpop.f32.mrb[1].mxu0 }
  0xe1   :  { %v197_v23 = vmax.f32 %v644_v21, 0.0  ;;  %v194_v24 = vmax.f32 %v98_v22, 0.0  ;;  %v173_v25 = vpop.f32.mrb[1].mxu1 }
  0xe2   :  { %v196_v26 = vmax.f32 %v173_v25, 0.0 }
  0xe3   :  { %v698_v27 = vpack.c.bf16 %v195_v20, %v194_v24 }
  0xe4   :  { %v702_v28 = vpack.c.bf16 %v197_v23, %v196_v26 }
  0xe5   :  { %700 = vmatpush3.bf16.msk.msra.mxu0 %vm699_vm7, %v698_v27 }
  0xe6   :  { %704 = vmatpush3.bf16.msk.msra.mxu1 %vm699_vm7, %v702_v28  ;;  %705 = vmatprep.subr.bf16.mxu0 %v760_v14 }
  0xe7   :  { %713 = vmatprep.subr.bf16.mxu1 %v760_v14 }
  0xe8   :  { %650 = vmatmul.mubr.msk.f32.vlgmr.msra.gmra.mrb[2].mxu0 %vm203_vm8, %v202_v29 }
  0xe9   :  { %657 = vmatmul.mubr.msk.f32.vlgmr.msra.gmra.mrb[2].mxu1 %vm203_vm8, %v202_v29  ;;  %667 = vmatprep.mubr.msk.f32.mxu0 %vm761_vm1, %v762_v15 }
  0xea   :  { %678 = vmatprep.mubr.msk.f32.mxu1 %vm761_vm1, %v762_v15 }
  0xee   :  { %708 = vmatpush3.bf16.xpose.msk.msra.mxu0 %vm707_vm9, %v681_v3 }
  0xef   :  { %716 = vmatpush3.bf16.xpose.msk.msra.mxu1 %vm707_vm9, %v689_v7  ;;  %709 = vmatprep.subr.bf16.mxu0 %v760_v14 }
  0xf0   :  { %717 = vmatprep.subr.bf16.mxu1 %v760_v14 }
  0xf6   :  { %712 = vmatpush3.bf16.xpose.msk.msra.mxu0 %vm707_vm9, %v685_v8 }
  0xf7   :  { %720 = vmatpush3.bf16.xpose.msk.msra.mxu1 %vm707_vm9, %v693_v12 }
 0x1bb   :  { %v273_v30 = vpop.f32.mrb[2].mxu0 }
 0x1bc   :  { %v348_v31 = vsel %vm347_vm10, %v273_v30, -inf  ;;  %v343_v32 = vpop.f32.mrb[2].mxu1  ;;  %v651_v33 = vpop.f32.mrb[3].mxu0 }
 0x1bd   :  { %v349_v34 = vrot.slane %v348_v31, 4  ;;  %v355_v35 = vsel %vm347_vm10, %v343_v32, -inf  ;;  %v658_v36 = vpop.f32.mrb[3].mxu1 }
 0x1be   :  { %v356_v37 = vrot.slane %v355_v35, 4 }
 0x1bf   :  { %v350_v38 = vmax.f32 %v348_v31, %v349_v34 }
 0x1c0   :  { %v357_v39 = vmax.f32 %v355_v35, %v356_v37 }
 0x1c1   :  { %v351_v40 = vrot.slane %v350_v38, 2 }
 0x1c2   :  { %v358_v41 = vrot.slane %v357_v39, 2 }
 0x1c3   :  { %v352_v42 = vmax.f32 %v350_v38, %v351_v40 }
 0x1c4   :  { %v359_v43 = vmax.f32 %v357_v39, %v358_v41 }
 0x1c5   :  { %v353_v44 = vrot.slane %v352_v42, 1 }
 0x1c6   :  { %v360_v45 = vrot.slane %v359_v43, 1 }
 0x1c7   :  { %v354_v46 = vmax.f32 %v352_v42, %v353_v44 }
 0x1c8   :  { %v361_v47 = vmax.f32 %v359_v43, %v360_v45 }
 0x1c9   :  { %v362_v48 = vsub.f32 %v273_v30, %v354_v46 }
 0x1ca   :  { %v363_v49 = vsub.f32 %v343_v32, %v361_v47 }
 0x1cb   :  { %v364_v50 = vmul.f32 1.442695, %v362_v48 }
 0x1cc   :  { %v366_v51 = vmul.f32 1.442695, %v363_v49 }
 0x1cd   :  { %728 = vpow2.f32 %v364_v50 }
 0x1ce   :  { %730 = vpow2.f32 %v366_v51 }
 0x1d7   :  { %v729_v52 = vpop.eup %728 }
 0x1d8   :  { %v731_v53 = vpop.eup %730  ;;  %v368_v54 = vsel %vm347_vm10, %v729_v52, 0.0 }
 0x1d9   :  { %v369_v55 = vrot.slane %v368_v54, 4  ;;  %v375_v56 = vsel %vm347_vm10, %v731_v53, 0.0 }
 0x1da   :  { %v376_v57 = vrot.slane %v375_v56, 4 }
 0x1db   :  { %v370_v58 = vadd.f32 %v369_v55, %v368_v54 }
 0x1dc   :  { %v377_v59 = vadd.f32 %v376_v57, %v375_v56 }
 0x1dd   :  { %v371_v60 = vrot.slane %v370_v58, 2 }
 0x1de   :  { %v378_v61 = vrot.slane %v377_v59, 2 }
 0x1df   :  { %v372_v62 = vadd.f32 %v371_v60, %v370_v58 }
 0x1e0   :  { %v379_v63 = vadd.f32 %v378_v61, %v377_v59 }
 0x1e1   :  { %v373_v0 = vrot.slane %v372_v62, 1 }
 0x1e2   :  { %v380_v1 = vrot.slane %v379_v63, 1 }
 0x1e3   :  { %v374_v2 = vadd.f32 %v373_v0, %v372_v62 }
 0x1e4   :  { %v381_v3 = vadd.f32 %v380_v1, %v379_v63 }
 0x1e5   :  { %732 = vrcp.f32 %v374_v2 }
 0x1e6   :  { %734 = vrcp.f32 %v381_v3 }
 0x1ef   :  { %v733_v4 = vpop.eup %732 }
 0x1f0   :  { %v735_v5 = vpop.eup %734  ;;  %v383_v6 = vmul.f32 %v733_v4, %v729_v52 }
 0x1f1   :  { %v385_v7 = vmul.f32 %v735_v5, %v731_v53 }
 0x1f2   :  { %668 = vmatmul.mubr.msk.f32.vlgmr.msra.gmra.mrb[4].mxu0 %vm203_vm8, %v383_v6 }
 0x1f3   :  { %679 = vmatmul.mubr.msk.f32.vlgmr.msra.gmra.mrb[4].mxu1 %vm203_vm8, %v385_v7 }
 0x2c5   :  { %v467_v8 = vpop.f32.mrb[4].mxu0 }
 0x2c6   :  { %557 = vst.msk [vmem:[#allocation2] sm:$0xf] %vm556_vm11, %v467_v8  ;;  %v552_v9 = vpop.f32.mrb[4].mxu1  ;;  %v669_v10 = vpop.f32.mrb[5].mxu0 }
 0x2c7   :  { %558 = vst.msk [vmem:[#allocation2 + $0x4] sm:$0xf] %vm556_vm11, %v552_v9  ;;  %v680_v11 = vpop.f32.mrb[5].mxu1 }
 0x2c8   :  { %747 = shalt.err (!%p744_p4)
}
 0x2c9   :  { %s748_s9 = scalar_lea.hbm %s859_s3, 128 }
 0x2ca   :  { %p749_p5 = scmp.ne.s32.totalorder %s859_s3, %s748_s9  ;;  %p752_p6 = scmp.lt.u32.totalorder %s748_s9, %s859_s3 }
 0x2cc   :  { %p754_p7 = pnand %p752_p6, %p749_p5 }
 0x2ce   :  { %757 = shalt.err (!%p754_p7)
}
 0x2cf   :  { %s765_s14 = smov 64   ;;  %s766_s15 = smov 4  }
 0x2d0   :  { %570 = dma.vmem_to_hbm [thread:$0]  %s565_s5, 128, %s859_s3, [#allocation3], %s765_s14, %s765_s14, %s766_s15  }
 0x2d1   :  { %758 = dma.done.wait [#allocation3], 128  }
 0x2d2   :  { %759 = vsyncadd [#allocation3], 4294967168 }
 0x2d3   :  { %574 = vsyncpa [#allocation3], 1 }

</bundles_post_ra>
